<compile_context>
chip_gen: v6e
topology: v6e:2x2x1
jax: 0.10.0
libtpu: 0.0.40
codegen_flags: <defaults>
</compile_context>

<pallas_src>
import functools

import jax
import jax.numpy as jnp
from jax.experimental import pallas as pl
from jax.experimental.pallas import tpu as pltpu


def _trigger_kernel(x_ref, trig_ref, lim_ref, o_ref):
    # x_ref / o_ref : (row_tile, W) tile of the streamed column window.
    # trig_ref      : (1, W) trigger row (0 outside the band).
    # lim_ref       : (1, W) clamp limit (1.0 in the band, +inf outside).
    #   min(x + 0, inf) == x  -> untouched columns are written back unchanged.
    o_ref[...] = jnp.minimum(x_ref[...] + trig_ref[...], lim_ref[...])


def _round_up(v, m):
    return -(-v // m) * m


def _choose_row_tile(n, width, itemsize, target_bytes):
    """Lane-dense row tile: ~target_bytes per block, >=2 blocks for large N."""
    sub = max(8, 32 // itemsize)  # f32 -> 8, bf16 -> 16, int8 -> 32 rows
    cap = max(sub, (target_bytes // max(width * itemsize, 1)) // sub * sub)
    if n <= 256:
        return n  # single block; full row dim (no (8, _) divisibility needed)
    if n > cap:
        return cap  # many ~target_bytes blocks; trailing block masked
    # Fits in one block: still split in two so the 1-D "parallel" grid can
    # shard across both TensorCores on v7x (harmless on v5e/v6e).
    half = min(_round_up(-(-n // 2), sub), cap)
    return half if half < n else n


def _select_window(a, b, f):
    """Return (c0, W, windowed): a W-wide, W-aligned column window covering
    [a, b) and lying inside [0, F), or the full row width as a fallback."""
    if f <= 512:
        return 0, f, False  # full-row streaming: contiguous DMA, simplest
    w = _round_up(max(b - a, 1), 128)
    max_w = min(f, 4 * w + 512)
    while w <= max_w:
        c0 = (a // w) * w  # W-aligned start so block indexing is exact
        if c0 + w >= b and c0 + w <= f:
            if 2 * w <= f:  # only worth it if the untouched fraction is large
                return c0, w, True
            break
        w += 128
    return 0, f, False


def _trigger_forward_impl(x, trigger, trigger_range,
                          target_block_bytes=2 * 1024 * 1024):
    n, f = x.shape
    a, b = int(trigger_range[0]), int(trigger_range[1])
    assert 0 <= a < b <= f, "trigger_range must lie inside the feature dim"
    assert trigger.shape == (b - a,)
    assert jnp.issubdtype(x.dtype, jnp.floating), "node features must be float"
    itemsize = jnp.dtype(x.dtype).itemsize

    c0, w, _windowed = _select_window(a, b, f)
    c0_blk = c0 // w
    row_tile = _choose_row_tile(n, w, itemsize, target_block_bytes)
    num_row_blocks = pl.cdiv(n, row_tile)

    # Per-column trigger / clamp-limit rows over the streamed window.
    trig_row = jnp.zeros((1, w), x.dtype).at[0, a - c0:b - c0].set(
        trigger.astype(x.dtype))
    lim_row = jnp.full((1, w), jnp.inf, x.dtype).at[0, a - c0:b - c0].set(
        jnp.asarray(1.0, x.dtype))

    bytes_moved = 2 * n * w * itemsize + 2 * w * itemsize
    return pl.pallas_call(
        _trigger_kernel,
        out_shape=jax.ShapeDtypeStruct((n, f), x.dtype),
        grid=(num_row_blocks,),
        in_specs=[
            pl.BlockSpec((row_tile, w), lambda i: (i, c0_blk)),
            pl.BlockSpec((1, w), lambda i: (0, 0)),
            pl.BlockSpec((1, w), lambda i: (0, 0)),
        ],
        out_specs=pl.BlockSpec((row_tile, w), lambda i: (i, c0_blk)),
        # Output aliases x's (donated) buffer: column blocks the grid never
        # visits keep x's original values, so untouched columns never move.
        input_output_aliases={0: 0},
        cost_estimate=pl.CostEstimate(
            flops=2 * n * w, transcendentals=0, bytes_accessed=bytes_moved),
        compiler_params=pltpu.CompilerParams(
            dimension_semantics=("parallel",)),
    )(x, trig_row, lim_row)


@functools.partial(jax.jit, static_argnames=("trigger_range",),
                   donate_argnums=(0,))
def trigger_all_node_forward(x, trigger, *, trigger_range):
    """x[:, a:b] = min(x[:, a:b] + trigger, 1); other columns unchanged.

    `x` is donated so the Pallas output aliases its HBM buffer in place
    (do not reuse `x` after calling).  `trigger_range` must be a static
    Python tuple of ints.
    """
    return _trigger_forward_impl(x, trigger, trigger_range)


if __name__ == "__main__":
    key = jax.random.PRNGKey(0)
    k1, k2, k3, k4 = jax.random.split(key, 4)

    # Case 1: small module-like shapes -> full-row streaming mode.
    N, F = 300, 384
    trigger_range = (160, 288)
    x = jax.random.uniform(k1, (N, F), dtype=jnp.float32)
    trigger = jax.random.uniform(
        k2, (trigger_range[1] - trigger_range[0],), dtype=jnp.float32)

    a, b = trigger_range
    ref = x.at[:, a:b].set(
        1.0 - jnp.maximum(1.0 - (x[:, a:b] + trigger[None, :]), 0.0))
    ref = jax.block_until_ready(ref)  # materialize before x is donated

    out = jax.block_until_ready(
        trigger_all_node_forward(x, trigger, trigger_range=trigger_range))
    assert out.shape == (N, F)
    assert jnp.allclose(out, ref, atol=1e-6), "mismatch vs reference (case 1)"

    # Case 2: wide feature dim with a narrow, deep band -> windowed mode
    # (only the 128-wide aligned column window is streamed), plus a node
    # count that exercises the masked trailing row block.
    N2, F2 = 1544, 1024
    trigger_range2 = (512, 600)
    x2 = jax.random.uniform(k3, (N2, F2), dtype=jnp.float32)
    trig2 = jax.random.uniform(
        k4, (trigger_range2[1] - trigger_range2[0],), dtype=jnp.float32)

    a2, b2 = trigger_range2
    ref2 = x2.at[:, a2:b2].set(
        1.0 - jnp.maximum(1.0 - (x2[:, a2:b2] + trig2[None, :]), 0.0))
    ref2 = jax.block_until_ready(ref2)

    out2 = jax.block_until_ready(
        trigger_all_node_forward(x2, trig2, trigger_range=trigger_range2))
    assert out2.shape == (N2, F2)
    assert jnp.allclose(out2, ref2, atol=1e-6), "mismatch vs reference (case 2)"

    print("KERNEL_OK")
</pallas_src>

<mosaic_0001>
module attributes {stable_mosaic.version = 11 : i64} {
  func.func @_trigger_kernel(%arg0: i32, %arg1: memref<152x384xf32, #tpu.memory_space<vmem>>, %arg2: memref<1x384xf32, #tpu.memory_space<vmem>>, %arg3: memref<1x384xf32, #tpu.memory_space<vmem>>, %arg4: memref<152x384xf32, #tpu.memory_space<vmem>>) attributes {dimension_semantics = [#tpu.dimension_semantics<parallel>], iteration_bounds = array<i64: 2>, scalar_prefetch = 0 : i64, scratch_operands = 0 : i64, tpu.core_type = #tpu.core_type<tc>, window_params = [{transform_indices = @transform_0, window_bounds = array<i64: 152, 384>}, {pipeline_mode = #tpu.pipeline_mode<synchronous>, transform_indices = @transform_1, window_bounds = array<i64: 1, 384>}, {pipeline_mode = #tpu.pipeline_mode<synchronous>, transform_indices = @transform_2, window_bounds = array<i64: 1, 384>}, {transform_indices = @transform_3, window_bounds = array<i64: 152, 384>}]} {
    %c0 = arith.constant 0 : index
    %c0_0 = arith.constant 0 : index
    %0 = vector.load %arg1[%c0, %c0_0] : memref<152x384xf32, #tpu.memory_space<vmem>>, vector<152x384xf32>
    %c0_1 = arith.constant 0 : index
    %c0_2 = arith.constant 0 : index
    %1 = vector.load %arg2[%c0_1, %c0_2] : memref<1x384xf32, #tpu.memory_space<vmem>>, vector<1x384xf32>
    %2 = vector.broadcast %1 : vector<1x384xf32> to vector<152x384xf32>
    %3 = arith.addf %0, %2 : vector<152x384xf32>
    %c0_3 = arith.constant 0 : index
    %c0_4 = arith.constant 0 : index
    %4 = vector.load %arg3[%c0_3, %c0_4] : memref<1x384xf32, #tpu.memory_space<vmem>>, vector<1x384xf32>
    %5 = vector.broadcast %4 : vector<1x384xf32> to vector<152x384xf32>
    %6 = arith.minimumf %3, %5 : vector<152x384xf32>
    %c0_5 = arith.constant 0 : index
    %c0_6 = arith.constant 0 : index
    %7 = vector.load %arg4[%c0_5, %c0_6] : memref<152x384xf32, #tpu.memory_space<vmem>>, vector<152x384xf32>
    tpu.vector_store %arg4[%c0_5, %c0_6], %6 {strides = array<i32>} : memref<152x384xf32, #tpu.memory_space<vmem>>, vector<152x384xf32>,
    return
  }
  func.func @transform_0(%arg0: i32) -> (i32, i32) {
    %c0_i32 = arith.constant 0 : i32
    %c0_i32_0 = arith.constant 0 : i32
    return %arg0, %c0_i32 : i32, i32
  }
  func.func @transform_1(%arg0: i32) -> (i32, i32) {
    %c0_i32 = arith.constant 0 : i32
    %c0_i32_0 = arith.constant 0 : i32
    %c0_i32_1 = arith.constant 0 : i32
    return %c0_i32, %c0_i32_0 : i32, i32
  }
  func.func @transform_2(%arg0: i32) -> (i32, i32) {
    %c0_i32 = arith.constant 0 : i32
    %c0_i32_0 = arith.constant 0 : i32
    %c0_i32_1 = arith.constant 0 : i32
    return %c0_i32, %c0_i32_0 : i32, i32
  }
  func.func @transform_3(%arg0: i32) -> (i32, i32) {
    %c0_i32 = arith.constant 0 : i32
    %c0_i32_0 = arith.constant 0 : i32
    return %arg0, %c0_i32 : i32, i32
  }
}

</mosaic_0001>

<bundles_post_ra>
// kernel: trigger_all_node_forward.1
= control target key start
LH: loop header
LB: loop body
LE: loop exit
PB: predicated region body
PF: predicated region fallthrough
CT: control target
= control target key end

     0   :  { %8 = vsyncpa [#allocation3], 0  ;;  %s1131_s0 = inlined_call_operand.hbm [shape: f32[300,384], index: 0, kind: input, shape index: {}, may-alias: {0,3}]   ;;  %s1132_s1 = inlined_call_operand.vmem [shape: f32[1,384], index: 1, kind: input, shape index: {}]   ;;  %s1133_s2 = inlined_call_operand.vmem [shape: f32[1,384], index: 2, kind: input, shape index: {}]   ;;  %s1134_s3 = inlined_call_operand.hbm [shape: f32[300,384], index: 3, kind: output, shape index: {}, may-alias: {0,3}]  }
   0x1   :  { %10 = vsyncpa [#allocation3 + $0x1], 0 }
   0x2   :  { %11 = vsyncpa [#allocation4], 0 }
   0x3   :  { %13 = vsyncpa [#allocation4 + $0x1], 0  ;;  %s726_s12 = smov 0   ;;  %s728_s13 = smov 0  }
   0x4   :  { %s730_s14 = smov 0   ;;  %s732_s15 = smov 0  }
   0x5 LB: > { %s747_s16 = sadd.s32 4294967295, %s698_s15   ;;  %s542_s17 = sadd.s32 4294967294, %s698_s15   ;;  %s698_s15 = sphi %s732_s15, %s1149_s15   ;;  %s694_s14 = sphi %s730_s14, %s1148_s14   ;;  %s690_s13 = sphi %s728_s13, %s1147_s13   ;;  %s686_s12 = sphi %s726_s12, %s1146_s12  }
   0x6   : > { %s751_s18 = sadd.s32 1, %s698_s15   ;;  %s26_s19 = sadd.s32 1, %s694_s14 }
   0x7   : > { %s23_s20 = ssub.s32 %s698_s15, %s751_s18  ;;  %p33_p0 = scmp.ne.s32.totalorder %s694_s14, %s690_s13 }
   0x8   : > { %p24_p1 = scmp.eq.s32.totalorder %s23_s20, 0  ;;  %p34_p2 = scmp.eq.s32.totalorder %s698_s15, 0 }
   0x9   : > { %p39_p3 = scmp.ne.s32.totalorder %s690_s13, %s686_s12  ;;  %p40_p4 = scmp.eq.s32.totalorder %s747_s16, 0 }
   0xa   : > { %s763_s21 = scalar_select %p24_p1, %s694_s14, %s26_s19  }
   0xb   : > { %p35_p5 = por %p34_p2, %p33_p0  ;;  %p765_p6 = por %p40_p4, %p39_p3 }
   0xc   : > { %p105_p7 = scmp.eq.s32.totalorder %s747_s16, 1  ;;  %p111_p8 = scmp.eq.s32.totalorder %s542_s17, 1 }
   0xd   : > { %s1137_s22 = scalar_select %p765_p6, 1, 0 }
   0xe   : > { %p566_p10 = scmp.lt.s32.totalorder %s698_s15, 2  ;;  %p772_p11 = por %p105_p7, %p33_p0 }
   0xf   : > { %p776_p12 = por %p111_p8, %p39_p3  ;;  %s137_s25 = sand.u32 1, %s694_s14  }
  0x10   : > { %s1138_s23 = scalar_select %p772_p11, 1, 0 }
  0x11   : > { %s1139_s24 = scalar_select %p776_p12, 1, 0 }
  0x12   : > { %s550_s26 = smul.u32 456, %s137_s25  ;;  %p782_p13 = pnand %p566_p10, %p35_p5 }
  0x13   : > { %s567_s27 = smul.u32 7296, %s698_s15  ;;  %s794_s7 = scalar_lea.sflag [#allocation3], %s137_s25 }
  0x14   : > { %s141_s5 = scalar_lea.vmem [#allocation2], %s550_s26  ;;  %p608_p2 = pneg %p782_p13 }
  0x15   : > { %s789_s4 = scalar_lea.hbm %s1131_s0, %s567_s27  ;;  %s149_s6 = sshll.u32 %s141_s5, 4  ;;  %s791_s6 = int_to_ptr.vmem [resolvable:$true] %s149_s6 }
  0x16   : > { %s606_s8 = scalar_lea.hbm %s789_s4, 7296  ;;  %s611_s11 = scalar_lea.hbm %s1131_s0, 14592 }
  0x17   : > { %p607_p1 = scmp.ne.s32.totalorder %s789_s4, %s606_s8  ;;  %p612_p5 = scmp.lt.s32.totalorder %s789_s4, %s1131_s0 }
  0x18   : > { %p613_p7 = scmp.lt.s32.totalorder %s611_s11, %s606_s8 }
  0x19   : > { %p609_p3 = pnand %p608_p2, %p607_p1 }
  0x1a   : > { %p614_p8 = por %p613_p7, %p612_p5 }
  0x1b   : > { %p610_p4 = pneg %p609_p3 }
  0x1d   : > { %p615_p10 = pnand %p614_p8, %p610_p4 }
  0x1f   : > { %618 = shalt.err (!%p615_p10)
}
  0x20   : > { %s619_s20 = scalar_lea.vmem %s791_s6, 7296  ;;  %s700_s25 = smov [#allocation2]  }
  0x21   : > { %p620_p9 = scmp.ne.s32.totalorder %s791_s6, %s619_s20  ;;  %s624_s26 = sshll.u32 %s700_s25, 4  ;;  %s625_s26 = int_to_ptr.vmem [resolvable:$false] %s624_s26 }
  0x22   : > { %s626_s27 = scalar_lea.vmem %s625_s26, 14592  ;;  %p627_p3 = scmp.lt.s32.totalorder %s791_s6, %s625_s26 }
  0x23   : > { %p622_p0 = pnand %p620_p9, %p608_p2  ;;  %p628_p12 = scmp.lt.s32.totalorder %s626_s27, %s619_s20 }
  0x25   : > { %p623_p1 = pneg %p622_p0  ;;  %p629_p11 = por %p628_p12, %p627_p3 }
  0x27   : > { %p630_p6 = pnand %p629_p11, %p623_p1 }
  0x29   : > { %633 = shalt.err (!%p630_p6)
}
  0x2a   : > { %s701_s29 = smov 384   ;;  %s702_s30 = smov 24  }
  0x2b   : > { %561 = dma.hbm_to_vmem [thread:$0]  (!%p782_p13), %s789_s4, 7296, %s791_s6, %s794_s7, %s701_s29, %s701_s29, %s702_s30  }
  0x2c   : > { %p157_p9 = scmp.lt.s32.totalorder %s698_s15, 3  ;;  %p1141_p0 = scmp.ge.s32.totalorder %s698_s15, 1 }
  0x2e   : > { %p158_p2 = pnand %p1141_p0, %p157_p9 }
  0x2f   : > { %s819_s5 = sand.u32 (!%p158_p2), 1, %s690_s13   ;;  %p1142_p6 = scmp.ne.s32.totalorder (!%p158_p2), %s1137_s22, 0 }
  0x30   : > { %161 = sbr.rel (%p158_p2) target bundleno = 113 (0x71), region = 32  ;;  %s164_s9 = scalar_lea.sflag (!%p158_p2), [#allocation3], %s819_s5 }
  0x31   : > { %s552_s8 = smul.u32 (!%p158_p2), 456, %s819_s5 }
  0x33   : > { %s825_s10 = scalar_lea.vmem (!%p158_p2), [#allocation2], %s552_s8 }
  0x35   : > { %677 = dma.done.wait (%p1142_p6), %s164_s9, 7296  }
  0x36   : > { %679 = vsyncadd (%p1142_p6), %s164_s9, 4294960000  ;;  %v251_v0 = vlaneseq  ;;  %v192_v5 = vld [vmem:[%s825_s10] sm:$0xff]  ;;  %v193_v10 = vld [vmem:[%s825_s10 + $0x8] sm:$0xff]  ;;  %s883_s7 = scalar_lea.vmem [#allocation5], %s552_s8  ;;  %s568_s11 = smul.u32 7296, %s747_s16 }
  0x37   : > { %v249_v6 = vld [vmem:[%s1132_s1] sm:$0x7]  ;;  %v194_v13 = vld [vmem:[%s825_s10 + $0x10] sm:$0xff]  ;;  %v197_v18 = vld [vmem:[%s825_s10 + $0x28] sm:$0xff]  ;;  %s469_s17 = sshll.u32 %s883_s7, 4  ;;  %s455_s25 = scalar_lea.sflag [#allocation4], %s819_s5  ;;  %s1081_s17 = int_to_ptr.vmem [resolvable:$true] %s469_s17 }
  0x38   : > { %v252_v1 = vshrl.u32 %v251_v0, 7  ;;  %v323_v7 = vld [vmem:[%s1133_s2] sm:$0x7]  ;;  %v198_v19 = vld [vmem:[%s825_s10 + $0x30] sm:$0xff]  ;;  %v201_v26 = vld [vmem:[%s825_s10 + $0x48] sm:$0xff]  ;;  %s1087_s20 = scalar_lea.hbm %s1134_s3, %s568_s11  ;;  %s634_s26 = scalar_lea.vmem %s1081_s17, 7296 }
  0x39   : > { %v195_v14 = vld [vmem:[%s825_s10 + $0x18] sm:$0xff]  ;;  %v196_v17 = vld [vmem:[%s825_s10 + $0x20] sm:$0xff]  ;;  %v202_v31 = vld [vmem:[%s825_s10 + $0x50] sm:$0xff]  ;;  %p635_p11 = scmp.ne.s32.totalorder %s1081_s17, %s634_s26  ;;  %p1143_p12 = scmp.ne.s32.totalorder %s1138_s23, 0 }
  0x3a   : > { %v253_v2 = vsub.s32 0, %v252_v1  ;;  %v257_v3 = vsub.s32 1, %v252_v1  ;;  %v261_v4 = vsub.s32 2, %v252_v1  ;;  %v199_v24 = vld [vmem:[%s825_s10 + $0x38] sm:$0xff]  ;;  %v200_v25 = vld [vmem:[%s825_s10 + $0x40] sm:$0xff]  ;;  %v205_v38 = vld [vmem:[%s825_s10 + $0x68] sm:$0xff] }
  0x3b   : > { %v203_v32 = vld [vmem:[%s825_s10 + $0x58] sm:$0xff]  ;;  %v204_v33 = vld [vmem:[%s825_s10 + $0x60] sm:$0xff]  ;;  %v206_v39 = vld [vmem:[%s825_s10 + $0x70] sm:$0xff]  ;;  %p636_p13 = pnand %p635_p11, %p1143_p12  ;;  %s703_s27 = smov [#allocation5]  }
  0x3c   : > { %v838_v8 = vrot.slane %v249_v6, %v253_v2  ;;  %v840_v9 = vrot.slane %v323_v7, %v253_v2  ;;  %v843_v11 = vrot.slane %v249_v6, %v257_v3  ;;  %v845_v12 = vrot.slane %v323_v7, %v257_v3  ;;  %v207_v40 = vld [vmem:[%s825_s10 + $0x78] sm:$0xff]  ;;  %v208_v49 = vld [vmem:[%s825_s10 + $0x80] sm:$0xff]  ;;  %v209_v50 = vld [vmem:[%s825_s10 + $0x88] sm:$0xff]  ;;  %s638_s29 = sshll.u32 %s703_s27, 4  ;;  %s639_s29 = int_to_ptr.vmem [resolvable:$false] %s638_s29 }
  0x3d   : > { %v849_v15 = vrot.slane %v249_v6, %v261_v4  ;;  %v851_v16 = vrot.slane %v323_v7, %v261_v4  ;;  %v210_v55 = vld [vmem:[%s825_s10 + $0x90] sm:$0xff]  ;;  %v211_v56 = vld [vmem:[%s825_s10 + $0x98] sm:$0xff]  ;;  %v212_v57 = vld [vmem:[%s825_s10 + $0xa0] sm:$0xff]  ;;  %p637_p4 = pneg %p636_p13  ;;  %s640_s30 = scalar_lea.vmem %s639_s29, 14592 }
  0x3e   : > { %v266_v20 = vadd.f32 %v838_v8, %v192_v5  ;;  %v267_v21 = vadd.f32 %v843_v11, %v193_v10  ;;  %v269_v22 = vadd.f32 %v838_v8, %v195_v14  ;;  %v270_v23 = vadd.f32 %v843_v11, %v196_v17  ;;  %v213_v62 = vld [vmem:[%s825_s10 + $0xa8] sm:$0xff]  ;;  %v214_v63 = vld [vmem:[%s825_s10 + $0xb0] sm:$0xff]  ;;  %v215_v0 = vld [vmem:[%s825_s10 + $0xb8] sm:$0xff]  ;;  %p641_p5 = scmp.lt.s32.totalorder %s1081_s17, %s639_s29  ;;  %p642_p7 = scmp.lt.s32.totalorder %s640_s30, %s634_s26 }
  0x3f   : > { %v268_v27 = vadd.f32 %v849_v15, %v194_v13  ;;  %v271_v28 = vadd.f32 %v849_v15, %v197_v18  ;;  %v272_v29 = vadd.f32 %v838_v8, %v198_v19  ;;  %v273_v30 = vadd.f32 %v843_v11, %v199_v24  ;;  %v216_v13 = vld [vmem:[%s825_s10 + $0xc0] sm:$0xff]  ;;  %v217_v14 = vld [vmem:[%s825_s10 + $0xc8] sm:$0xff] }
  0x40   : > { %v340_v34 = vmin.f32 %v266_v20, %v840_v9  ;;  %v341_v35 = vmin.f32 %v267_v21, %v845_v12  ;;  %v343_v36 = vmin.f32 %v269_v22, %v840_v9  ;;  %v344_v37 = vmin.f32 %v270_v23, %v845_v12  ;;  %v218_v21 = vld [vmem:[%s825_s10 + $0xd0] sm:$0xff]  ;;  %v219_v22 = vld [vmem:[%s825_s10 + $0xd8] sm:$0xff]  ;;  %v220_v23 = vld [vmem:[%s825_s10 + $0xe0] sm:$0xff]  ;;  %p643_p8 = por %p642_p7, %p641_p5 }
  0x41   : > { %v342_v41 = vmin.f32 %v268_v27, %v851_v16  ;;  %v345_v42 = vmin.f32 %v271_v28, %v851_v16  ;;  %v346_v43 = vmin.f32 %v272_v29, %v840_v9  ;;  %v347_v44 = vmin.f32 %v273_v30, %v845_v12  ;;  %v221_v28 = vld [vmem:[%s825_s10 + $0xe8] sm:$0xff]  ;;  %v222_v29 = vld [vmem:[%s825_s10 + $0xf0] sm:$0xff]  ;;  %v223_v30 = vld [vmem:[%s825_s10 + $0xf8] sm:$0xff] }
  0x42   : > { %397 = vst [vmem:[%s883_s7] sm:$0xff] %v340_v34  ;;  %398 = vst [vmem:[%s883_s7 + $0x8] sm:$0xff] %v341_v35  ;;  %v274_v45 = vadd.f32 %v849_v15, %v200_v25  ;;  %v275_v46 = vadd.f32 %v838_v8, %v201_v26  ;;  %v276_v47 = vadd.f32 %v843_v11, %v202_v31  ;;  %p644_p10 = pnand %p643_p8, %p637_p4 }
  0x43   : > { %400 = vst [vmem:[%s883_s7 + $0x18] sm:$0xff] %v343_v36  ;;  %401 = vst [vmem:[%s883_s7 + $0x20] sm:$0xff] %v344_v37  ;;  %v277_v48 = vadd.f32 %v849_v15, %v203_v32  ;;  %v278_v51 = vadd.f32 %v838_v8, %v204_v33  ;;  %v279_v52 = vadd.f32 %v843_v11, %v205_v38 }
  0x44   : > { %399 = vst [vmem:[%s883_s7 + $0x10] sm:$0xff] %v342_v41  ;;  %402 = vst [vmem:[%s883_s7 + $0x28] sm:$0xff] %v345_v42  ;;  %v280_v53 = vadd.f32 %v849_v15, %v206_v39  ;;  %v281_v54 = vadd.f32 %v838_v8, %v207_v40  ;;  %v348_v58 = vmin.f32 %v274_v45, %v851_v16  ;;  %v224_v39 = vld [vmem:[%s825_s10 + $0x100] sm:$0xff]  ;;  %v225_v40 = vld [vmem:[%s825_s10 + $0x108] sm:$0xff] }
  0x45   : > { %403 = vst [vmem:[%s883_s7 + $0x30] sm:$0xff] %v346_v43  ;;  %404 = vst [vmem:[%s883_s7 + $0x38] sm:$0xff] %v347_v44  ;;  %v349_v59 = vmin.f32 %v275_v46, %v840_v9  ;;  %v350_v60 = vmin.f32 %v276_v47, %v845_v12  ;;  %v351_v61 = vmin.f32 %v277_v48, %v851_v16  ;;  %v226_v45 = vld [vmem:[%s825_s10 + $0x110] sm:$0xff]  ;;  %v227_v46 = vld [vmem:[%s825_s10 + $0x118] sm:$0xff] }
  0x46   : > { %v352_v1 = vmin.f32 %v278_v51, %v840_v9  ;;  %v353_v2 = vmin.f32 %v279_v52, %v845_v12  ;;  %v354_v3 = vmin.f32 %v280_v53, %v851_v16  ;;  %v355_v4 = vmin.f32 %v281_v54, %v840_v9  ;;  %405 = vst [vmem:[%s883_s7 + $0x40] sm:$0xff] %v348_v58  ;;  %v228_v47 = vld [vmem:[%s825_s10 + $0x120] sm:$0xff]  ;;  %v229_v52 = vld [vmem:[%s825_s10 + $0x128] sm:$0xff]  ;;  %v230_v53 = vld [vmem:[%s825_s10 + $0x130] sm:$0xff] }
  0x47   : > { %406 = vst [vmem:[%s883_s7 + $0x48] sm:$0xff] %v349_v59  ;;  %407 = vst [vmem:[%s883_s7 + $0x50] sm:$0xff] %v350_v60  ;;  %v282_v5 = vadd.f32 %v843_v11, %v208_v49  ;;  %v283_v6 = vadd.f32 %v849_v15, %v209_v50  ;;  %v284_v7 = vadd.f32 %v838_v8, %v210_v55  ;;  %v231_v54 = vld [vmem:[%s825_s10 + $0x138] sm:$0xff] }
  0x48   : > { %408 = vst [vmem:[%s883_s7 + $0x58] sm:$0xff] %v351_v61  ;;  %v285_v10 = vadd.f32 %v843_v11, %v211_v56  ;;  %409 = vst [vmem:[%s883_s7 + $0x60] sm:$0xff] %v352_v1  ;;  %v286_v17 = vadd.f32 %v849_v15, %v212_v57  ;;  %v287_v18 = vadd.f32 %v838_v8, %v213_v62 }
  0x49   : > { %410 = vst [vmem:[%s883_s7 + $0x68] sm:$0xff] %v353_v2  ;;  %411 = vst [vmem:[%s883_s7 + $0x70] sm:$0xff] %v354_v3  ;;  %v288_v19 = vadd.f32 %v843_v11, %v214_v63  ;;  %v289_v20 = vadd.f32 %v849_v15, %v215_v0  ;;  %v356_v24 = vmin.f32 %v282_v5, %v845_v12  ;;  %v232_v63 = vld [vmem:[%s825_s10 + $0x140] sm:$0xff]  ;;  %v233_v0 = vld [vmem:[%s825_s10 + $0x148] sm:$0xff] }
  0x4a   : > { %412 = vst [vmem:[%s883_s7 + $0x78] sm:$0xff] %v355_v4  ;;  %v357_v25 = vmin.f32 %v283_v6, %v851_v16  ;;  %v358_v26 = vmin.f32 %v284_v7, %v840_v9  ;;  %v359_v27 = vmin.f32 %v285_v10, %v845_v12  ;;  %v360_v31 = vmin.f32 %v286_v17, %v851_v16  ;;  %v234_v5 = vld [vmem:[%s825_s10 + $0x150] sm:$0xff]  ;;  %v235_v6 = vld [vmem:[%s825_s10 + $0x158] sm:$0xff]  ;;  %v236_v7 = vld [vmem:[%s825_s10 + $0x160] sm:$0xff] }
  0x4b   : > { %v361_v32 = vmin.f32 %v287_v18, %v840_v9  ;;  %v362_v33 = vmin.f32 %v288_v19, %v845_v12  ;;  %v363_v34 = vmin.f32 %v289_v20, %v851_v16  ;;  %413 = vst [vmem:[%s883_s7 + $0x80] sm:$0xff] %v356_v24  ;;  %v290_v35 = vadd.f32 %v838_v8, %v216_v13  ;;  %v237_v18 = vld [vmem:[%s825_s10 + $0x168] sm:$0xff]  ;;  %v238_v19 = vld [vmem:[%s825_s10 + $0x170] sm:$0xff]  ;;  %v239_v20 = vld [vmem:[%s825_s10 + $0x178] sm:$0xff] }
  0x4c   : > { %414 = vst [vmem:[%s883_s7 + $0x88] sm:$0xff] %v357_v25  ;;  %415 = vst [vmem:[%s883_s7 + $0x90] sm:$0xff] %v358_v26  ;;  %v291_v36 = vadd.f32 %v843_v11, %v217_v14  ;;  %v292_v37 = vadd.f32 %v849_v15, %v218_v21  ;;  %v293_v38 = vadd.f32 %v838_v8, %v219_v22 }
  0x4d   : > { %416 = vst [vmem:[%s883_s7 + $0x98] sm:$0xff] %v359_v27  ;;  %417 = vst [vmem:[%s883_s7 + $0xa0] sm:$0xff] %v360_v31  ;;  %v294_v41 = vadd.f32 %v843_v11, %v220_v23  ;;  %v295_v42 = vadd.f32 %v849_v15, %v221_v28  ;;  %v296_v43 = vadd.f32 %v838_v8, %v222_v29  ;;  %v240_v29 = vld [vmem:[%s825_s10 + $0x180] sm:$0xff] }
  0x4e   : > { %418 = vst [vmem:[%s883_s7 + $0xa8] sm:$0xff] %v361_v32  ;;  %419 = vst [vmem:[%s883_s7 + $0xb0] sm:$0xff] %v362_v33  ;;  %v297_v44 = vadd.f32 %v843_v11, %v223_v30  ;;  %v364_v48 = vmin.f32 %v290_v35, %v840_v9  ;;  %v365_v49 = vmin.f32 %v291_v36, %v845_v12  ;;  %v241_v30 = vld [vmem:[%s825_s10 + $0x188] sm:$0xff]  ;;  %v242_v35 = vld [vmem:[%s825_s10 + $0x190] sm:$0xff] }
  0x4f   : > { %420 = vst [vmem:[%s883_s7 + $0xb8] sm:$0xff] %v363_v34  ;;  %v366_v50 = vmin.f32 %v292_v37, %v851_v16  ;;  %v367_v51 = vmin.f32 %v293_v38, %v840_v9  ;;  %v368_v55 = vmin.f32 %v294_v41, %v845_v12  ;;  %v369_v56 = vmin.f32 %v295_v42, %v851_v16  ;;  %v243_v36 = vld [vmem:[%s825_s10 + $0x198] sm:$0xff]  ;;  %v244_v37 = vld [vmem:[%s825_s10 + $0x1a0] sm:$0xff]  ;;  %v245_v42 = vld [vmem:[%s825_s10 + $0x1a8] sm:$0xff] }
  0x50   : > { %v370_v57 = vmin.f32 %v296_v43, %v840_v9  ;;  %v371_v58 = vmin.f32 %v297_v44, %v845_v12  ;;  %421 = vst [vmem:[%s883_s7 + $0xc0] sm:$0xff] %v364_v48  ;;  %422 = vst [vmem:[%s883_s7 + $0xc8] sm:$0xff] %v365_v49  ;;  %v298_v59 = vadd.f32 %v849_v15, %v224_v39  ;;  %v246_v43 = vld [vmem:[%s825_s10 + $0x1b0] sm:$0xff]  ;;  %v247_v44 = vld [vmem:[%s825_s10 + $0x1b8] sm:$0xff] }
  0x51   : > { %423 = vst [vmem:[%s883_s7 + $0xd0] sm:$0xff] %v366_v50  ;;  %424 = vst [vmem:[%s883_s7 + $0xd8] sm:$0xff] %v367_v51  ;;  %v299_v60 = vadd.f32 %v838_v8, %v225_v40  ;;  %v300_v61 = vadd.f32 %v843_v11, %v226_v45  ;;  %v301_v62 = vadd.f32 %v849_v15, %v227_v46 }
  0x52   : > { %425 = vst [vmem:[%s883_s7 + $0xe0] sm:$0xff] %v368_v55  ;;  %426 = vst [vmem:[%s883_s7 + $0xe8] sm:$0xff] %v369_v56  ;;  %v302_v1 = vadd.f32 %v838_v8, %v228_v47  ;;  %v303_v2 = vadd.f32 %v843_v11, %v229_v52  ;;  %v304_v3 = vadd.f32 %v849_v15, %v230_v53 }
  0x53   : > { %427 = vst [vmem:[%s883_s7 + $0xf0] sm:$0xff] %v370_v57  ;;  %428 = vst [vmem:[%s883_s7 + $0xf8] sm:$0xff] %v371_v58  ;;  %v305_v4 = vadd.f32 %v838_v8, %v231_v54  ;;  %v372_v10 = vmin.f32 %v298_v59, %v851_v16  ;;  %v373_v13 = vmin.f32 %v299_v60, %v840_v9  ;;  %v248_v57 = vld [vmem:[%s825_s10 + $0x1c0] sm:$0xff] }
  0x54   : > { %v374_v14 = vmin.f32 %v300_v61, %v845_v12  ;;  %v375_v17 = vmin.f32 %v301_v62, %v851_v16  ;;  %v376_v21 = vmin.f32 %v302_v1, %v840_v9  ;;  %v377_v22 = vmin.f32 %v303_v2, %v845_v12 }
  0x55   : > { %v378_v23 = vmin.f32 %v304_v3, %v851_v16  ;;  %v379_v24 = vmin.f32 %v305_v4, %v840_v9  ;;  %429 = vst [vmem:[%s883_s7 + $0x100] sm:$0xff] %v372_v10  ;;  %430 = vst [vmem:[%s883_s7 + $0x108] sm:$0xff] %v373_v13  ;;  %v306_v25 = vadd.f32 %v843_v11, %v232_v63 }
  0x56   : > { %431 = vst [vmem:[%s883_s7 + $0x110] sm:$0xff] %v374_v14  ;;  %432 = vst [vmem:[%s883_s7 + $0x118] sm:$0xff] %v375_v17  ;;  %v307_v26 = vadd.f32 %v849_v15, %v233_v0  ;;  %v308_v27 = vadd.f32 %v838_v8, %v234_v5  ;;  %v309_v28 = vadd.f32 %v843_v11, %v235_v6 }
  0x57   : > { %433 = vst [vmem:[%s883_s7 + $0x120] sm:$0xff] %v376_v21  ;;  %434 = vst [vmem:[%s883_s7 + $0x128] sm:$0xff] %v377_v22  ;;  %v310_v31 = vadd.f32 %v849_v15, %v236_v7  ;;  %v311_v32 = vadd.f32 %v838_v8, %v237_v18  ;;  %v312_v33 = vadd.f32 %v843_v11, %v238_v19 }
  0x58   : > { %435 = vst [vmem:[%s883_s7 + $0x130] sm:$0xff] %v378_v23  ;;  %436 = vst [vmem:[%s883_s7 + $0x138] sm:$0xff] %v379_v24  ;;  %v313_v34 = vadd.f32 %v849_v15, %v239_v20  ;;  %v380_v38 = vmin.f32 %v306_v25, %v845_v12  ;;  %v381_v39 = vmin.f32 %v307_v26, %v851_v16 }
  0x59   : > { %v382_v40 = vmin.f32 %v308_v27, %v840_v9  ;;  %v383_v41 = vmin.f32 %v309_v28, %v845_v12  ;;  %v384_v45 = vmin.f32 %v310_v31, %v851_v16  ;;  %v385_v46 = vmin.f32 %v311_v32, %v840_v9 }
  0x5a   : > { %v386_v47 = vmin.f32 %v312_v33, %v845_v12  ;;  %v387_v48 = vmin.f32 %v313_v34, %v851_v16  ;;  %437 = vst [vmem:[%s883_s7 + $0x140] sm:$0xff] %v380_v38  ;;  %438 = vst [vmem:[%s883_s7 + $0x148] sm:$0xff] %v381_v39  ;;  %v314_v49 = vadd.f32 %v838_v8, %v240_v29 }
  0x5b   : > { %439 = vst [vmem:[%s883_s7 + $0x150] sm:$0xff] %v382_v40  ;;  %440 = vst [vmem:[%s883_s7 + $0x158] sm:$0xff] %v383_v41  ;;  %v315_v50 = vadd.f32 %v843_v11, %v241_v30  ;;  %v316_v51 = vadd.f32 %v849_v15, %v242_v35  ;;  %v317_v52 = vadd.f32 %v838_v8, %v243_v36 }
  0x5c   : > { %441 = vst [vmem:[%s883_s7 + $0x160] sm:$0xff] %v384_v45  ;;  %442 = vst [vmem:[%s883_s7 + $0x168] sm:$0xff] %v385_v46  ;;  %v318_v53 = vadd.f32 %v843_v11, %v244_v37  ;;  %v319_v54 = vadd.f32 %v849_v15, %v245_v42  ;;  %v320_v55 = vadd.f32 %v838_v8, %v246_v43 }
  0x5d   : > { %443 = vst [vmem:[%s883_s7 + $0x170] sm:$0xff] %v386_v47  ;;  %444 = vst [vmem:[%s883_s7 + $0x178] sm:$0xff] %v387_v48  ;;  %v321_v56 = vadd.f32 %v843_v11, %v247_v44  ;;  %v388_v58 = vmin.f32 %v314_v49, %v840_v9  ;;  %v389_v59 = vmin.f32 %v315_v50, %v845_v12 }
  0x5e   : > { %v390_v60 = vmin.f32 %v316_v51, %v851_v16  ;;  %v391_v61 = vmin.f32 %v317_v52, %v840_v9  ;;  %v392_v8 = vmin.f32 %v318_v53, %v845_v12  ;;  %v393_v11 = vmin.f32 %v319_v54, %v851_v16 }
  0x5f   : > { %v394_v62 = vmin.f32 %v320_v55, %v840_v9  ;;  %v395_v63 = vmin.f32 %v321_v56, %v845_v12  ;;  %445 = vst [vmem:[%s883_s7 + $0x180] sm:$0xff] %v388_v58  ;;  %446 = vst [vmem:[%s883_s7 + $0x188] sm:$0xff] %v389_v59  ;;  %v322_v0 = vadd.f32 %v849_v15, %v248_v57 }
  0x60   : > { %447 = vst [vmem:[%s883_s7 + $0x190] sm:$0xff] %v390_v60  ;;  %448 = vst [vmem:[%s883_s7 + $0x198] sm:$0xff] %v391_v61 }
  0x61   : > { %449 = vst [vmem:[%s883_s7 + $0x1a0] sm:$0xff] %v392_v8  ;;  %450 = vst [vmem:[%s883_s7 + $0x1a8] sm:$0xff] %v393_v11  ;;  %v396_v9 = vmin.f32 %v322_v0, %v851_v16 }
  0x62   : > { %451 = vst [vmem:[%s883_s7 + $0x1b0] sm:$0xff] %v394_v62  ;;  %452 = vst [vmem:[%s883_s7 + $0x1b8] sm:$0xff] %v395_v63 }
  0x63   : > { %453 = vst [vmem:[%s883_s7 + $0x1c0] sm:$0xff] %v396_v9 }
  0x64   : > { %647 = shalt.err (!%p644_p10)
}
  0x65   : > { %s648_s8 = scalar_lea.hbm %s1087_s20, 7296  ;;  %s652_s28 = scalar_lea.hbm %s1134_s3, 14592 }
  0x66   : > { %p649_p1 = scmp.ne.s32.totalorder %s1087_s20, %s648_s8  ;;  %p653_p0 = scmp.lt.s32.totalorder %s1087_s20, %s1134_s3 }
  0x67   : > { %p654_p2 = scmp.lt.s32.totalorder %s652_s28, %s648_s8 }
  0x68   : > { %p650_p3 = pnand %p649_p1, %p1143_p12 }
  0x69   : > { %p655_p6 = por %p654_p2, %p653_p0 }
  0x6a   : > { %p651_p9 = pneg %p650_p3 }
  0x6c   : > { %p656_p11 = pnand %p655_p6, %p651_p9 }
  0x6e   : > { %659 = shalt.err (!%p656_p11)
}
  0x6f   : > { %s704_s22 = smov 384   ;;  %s705_s7 = smov 24  }
  0x70   : > { %556 = dma.vmem_to_hbm [thread:$0]  (%p1143_p12), %s1081_s17, 7296, %s1087_s20, %s455_s25, %s704_s22, %s704_s22, %s705_s7  }
  0x71 PF: > { %s484_s11 = sand.u32 1, %s686_s12   ;;  %p1144_p13 = scmp.ne.s32.totalorder %s1139_s24, 0 }
  0x72   : > { %p1145_p4 = scmp.ge.s32.totalorder %s698_s15, 2  ;;  %s485_s16 = scalar_lea.sflag [#allocation4], %s484_s11 }
  0x74   : > { %p563_p5 = pnand %p1145_p4, %p1144_p13 }
  0x76   : > { %p564_p7 = pneg %p563_p5 }
  0x78   : > { %681 = dma.done.wait (%p564_p7), %s485_s16, 7296  }
  0x79   : > { %683 = vsyncadd (%p564_p7), %s485_s16, 4294960000  ;;  %p16_p8 = scmp.ge.s32.totalorder %s751_s18, 4   ;;  %s1146_s12 = smov %s690_s13 }
  0x7a   : > { %s1147_s13 = smov %s694_s14  ;;  %s1148_s14 = smov %s763_s21 }
  0x7b   : > { %s1149_s15 = smov %s751_s18  ;;  %18 = sbr.rel (!%p16_p8) target bundleno = 5 (0x5), region = 77 }
  0x80   :  { %490 = vsyncpa [#allocation3], 1 }
  0x81   :  { %492 = vsyncpa [#allocation3 + $0x1], 1 }
  0x82   :  { %493 = vsyncpa [#allocation4], 1 }
  0x83   :  { %495 = vsyncpa [#allocation4 + $0x1], 1 }

</bundles_post_ra>
